<compile_context>
chip_gen: v7x
topology: tpu7x:2x2x1
jax: 0.10.0
libtpu: 0.0.40
codegen_flags: <defaults>
</compile_context>

<pallas_src>
import functools

import jax
import jax.numpy as jnp
from jax.experimental import pallas as pl
from jax.experimental.pallas import tpu as pltpu


def _postprocess_kernel(*refs, box_xyxy: bool, has_dxdy: bool, has_orig: bool):
    # refs = (boxes, sizes, ratios, [dxdy], [orig_sizes], out), all transposed
    # to (coords, TB): batch on the lane axis.
    idx = 0
    boxes_ref = refs[idx]; idx += 1          # (4, TB) cxcywh or xyxy (normalized)
    sizes_ref = refs[idx]; idx += 1          # (2, TB) rows: (img_h, img_w)
    ratios_ref = refs[idx]; idx += 1         # (2, TB) rows: (ratio_h, ratio_w)
    dxdy_ref = None
    if has_dxdy:
        dxdy_ref = refs[idx]; idx += 1       # (2, TB) rows: (dx, dy)
    orig_ref = None
    if has_orig:
        orig_ref = refs[idx]; idx += 1       # (2, TB) rows: (orig_h, orig_w)
    out_ref = refs[idx]                      # (4, TB) xyxy in original-image pixels

    b = boxes_ref[...]                       # (4, TB)

    if not box_xyxy:
        cx = b[0:1, :]
        cy = b[1:2, :]
        w = b[2:3, :]
        h = b[3:4, :]
        b = jnp.concatenate(
            [cx - 0.5 * w, cy - 0.5 * h, cx + 0.5 * w, cy + 0.5 * h], axis=0)

    # scale by resized image size: stack([w, h, w, h])
    img_h = sizes_ref[0:1, :]
    img_w = sizes_ref[1:2, :]
    b = b * jnp.concatenate([img_w, img_h, img_w, img_h], axis=0)

    # optional crop offset: boxes - cat([dxdy, dxdy])
    if has_dxdy:
        dx = dxdy_ref[0:1, :]
        dy = dxdy_ref[1:2, :]
        b = b - jnp.concatenate([dx, dy, dx, dy], axis=0)

    # clamp(min=0)
    b = jnp.maximum(b, 0.0)

    # divide by resize ratios: stack([rw, rh, rw, rh])
    rh = ratios_ref[0:1, :]
    rw = ratios_ref[1:2, :]
    b = b / jnp.concatenate([rw, rh, rw, rh], axis=0)

    # clip to original image size: min(boxes, stack([ow, oh, ow, oh]))
    if has_orig:
        oh = orig_ref[0:1, :]
        ow = orig_ref[1:2, :]
        b = jnp.minimum(b, jnp.concatenate([ow, oh, ow, oh], axis=0))

    out_ref[...] = b.astype(out_ref.dtype)


def _round_up(n, m):
    return ((n + m - 1) // m) * m


def post_process(pred_boxes, sizes, ratios, orig_sizes=None, dxdy=None,
                 box_xyxy=False):
    """Fused Pallas implementation of PostProcess.forward.

    pred_boxes: (B, 1, 4) or (B, 4); sizes/ratios/orig_sizes/dxdy: (B, 2).
    Returns (B, 4) xyxy boxes in original-image coordinates (float32).
    """
    boxes = jnp.asarray(pred_boxes, jnp.float32)
    if boxes.ndim == 3:           # squeeze(1) like the torch module
        boxes = boxes[:, 0, :]
    has_dxdy = dxdy is not None
    has_orig = orig_sizes is not None

    B = boxes.shape[0]

    # Batch axis goes on the lane axis: tile in multiples of 128, cap at 1024.
    tile_b = 1024 if B > 1024 else _round_up(max(B, 1), 128)
    Bp = _round_up(B, tile_b)

    def prep(a, fill):
        """(B, C) -> transposed, batch-padded (C, Bp) float32."""
        a = jnp.asarray(a, jnp.float32).T          # (C, B)
        pad = Bp - a.shape[1]
        if pad:
            a = jnp.pad(a, ((0, 0), (0, pad)), constant_values=fill)
        return a

    args = [
        prep(boxes, 0.0),
        prep(sizes, 1.0),
        prep(ratios, 1.0),        # pad with 1 so padded lanes never divide by 0
    ]
    in_specs = [
        pl.BlockSpec((4, tile_b), lambda i: (0, i)),
        pl.BlockSpec((2, tile_b), lambda i: (0, i)),
        pl.BlockSpec((2, tile_b), lambda i: (0, i)),
    ]
    if has_dxdy:
        args.append(prep(dxdy, 0.0))
        in_specs.append(pl.BlockSpec((2, tile_b), lambda i: (0, i)))
    if has_orig:
        args.append(prep(orig_sizes, 1.0))
        in_specs.append(pl.BlockSpec((2, tile_b), lambda i: (0, i)))

    kernel = functools.partial(
        _postprocess_kernel,
        box_xyxy=box_xyxy, has_dxdy=has_dxdy, has_orig=has_orig,
    )

    out = pl.pallas_call(
        kernel,
        out_shape=jax.ShapeDtypeStruct((4, Bp), jnp.float32),
        grid=(Bp // tile_b,),
        in_specs=in_specs,
        out_specs=pl.BlockSpec((4, tile_b), lambda i: (0, i)),
        compiler_params=pltpu.CompilerParams(
            dimension_semantics=("parallel",),
        ),
    )(*args)
    return out.T[:B]


def post_process_reference(pred_boxes, sizes, ratios, orig_sizes=None,
                           dxdy=None, box_xyxy=False):
    """Pure-jnp mirror of the PyTorch module (for correctness checking)."""
    boxes = jnp.asarray(pred_boxes, jnp.float32)
    if boxes.ndim == 3:
        boxes = boxes[:, 0, :]
    if not box_xyxy:
        cx, cy, w, h = jnp.split(boxes, 4, axis=1)
        boxes = jnp.concatenate(
            [cx - 0.5 * w, cy - 0.5 * h, cx + 0.5 * w, cy + 0.5 * h], axis=1)
    img_h, img_w = sizes[:, 0], sizes[:, 1]
    boxes = boxes * jnp.stack([img_w, img_h, img_w, img_h], axis=1)
    if dxdy is not None:
        boxes = boxes - jnp.concatenate([dxdy, dxdy], axis=1)
    boxes = jnp.maximum(boxes, 0.0)
    rh, rw = ratios[:, 0], ratios[:, 1]
    boxes = boxes / jnp.stack([rw, rh, rw, rh], axis=1)
    if orig_sizes is not None:
        oh, ow = orig_sizes[:, 0], orig_sizes[:, 1]
        boxes = jnp.minimum(boxes, jnp.stack([ow, oh, ow, oh], axis=1))
    return boxes


if __name__ == "__main__":
    key = jax.random.PRNGKey(0)
    kb, ks, kr, ko, kd = jax.random.split(key, 5)

    # Small shapes consistent with the module's forward:
    # batch=8 images, 1 predicted box per image (squeeze(1)), (h, w) pairs.
    batch = 8
    pred_boxes = jax.random.uniform(
        kb, (batch, 1, 4), jnp.float32, 0.05, 0.8)          # normalized cxcywh
    rsz_sizes = jax.random.uniform(
        ks, (batch, 2), jnp.float32, 200.0, 800.0)           # resized (h, w)
    ratios = jax.random.uniform(
        kr, (batch, 2), jnp.float32, 0.5, 1.5)               # (ratio_h, ratio_w)
    orig_sizes = jax.random.uniform(
        ko, (batch, 2), jnp.float32, 300.0, 900.0)           # original (h, w)
    dxdy = jax.random.uniform(
        kd, (batch, 2), jnp.float32, 0.0, 10.0)              # crop offsets

    # Full path: cxcywh conversion + dxdy shift + orig-size clipping.
    out = post_process(pred_boxes, rsz_sizes, ratios, orig_sizes, dxdy,
                       box_xyxy=False)
    out = jax.block_until_ready(out)
    ref = post_process_reference(pred_boxes, rsz_sizes, ratios, orig_sizes,
                                 dxdy, box_xyxy=False)
    assert out.shape == (batch, 4)
    assert jnp.allclose(out, ref, atol=1e-4, rtol=1e-5)

    # No-dxdy / no-orig / xyxy-input branch coverage.
    out2 = post_process(pred_boxes, rsz_sizes, ratios, None, None,
                        box_xyxy=True)
    out2 = jax.block_until_ready(out2)
    ref2 = post_process_reference(pred_boxes, rsz_sizes, ratios, None, None,
                                  box_xyxy=True)
    assert jnp.allclose(out2, ref2, atol=1e-4, rtol=1e-5)

    print("KERNEL_OK")
</pallas_src>

<mosaic_0001>
module attributes {stable_mosaic.version = 11 : i64} {
  func.func @_postprocess_kernel(%arg0: i32, %arg1: memref<4x128xf32, #tpu.memory_space<vmem>>, %arg2: memref<2x128xf32, #tpu.memory_space<vmem>>, %arg3: memref<2x128xf32, #tpu.memory_space<vmem>>, %arg4: memref<2x128xf32, #tpu.memory_space<vmem>>, %arg5: memref<2x128xf32, #tpu.memory_space<vmem>>, %arg6: memref<4x128xf32, #tpu.memory_space<vmem>>) attributes {dimension_semantics = [#tpu.dimension_semantics<parallel>], iteration_bounds = array<i64: 1>, scalar_prefetch = 0 : i64, scratch_operands = 0 : i64, tpu.core_type = #tpu.core_type<tc>, window_params = [{transform_indices = @transform_0, window_bounds = array<i64: 4, 128>}, {transform_indices = @transform_1, window_bounds = array<i64: 2, 128>}, {transform_indices = @transform_2, window_bounds = array<i64: 2, 128>}, {transform_indices = @transform_3, window_bounds = array<i64: 2, 128>}, {transform_indices = @transform_4, window_bounds = array<i64: 2, 128>}, {transform_indices = @transform_5, window_bounds = array<i64: 4, 128>}]} {
    %c0 = arith.constant 0 : index
    %c0_0 = arith.constant 0 : index
    %0 = vector.load %arg1[%c0, %c0_0] : memref<4x128xf32, #tpu.memory_space<vmem>>, vector<4x128xf32>
    %1 = vector.extract_strided_slice %0 {offsets = [0, 0], sizes = [1, 128], strides = [1, 1]} : vector<4x128xf32> to vector<1x128xf32>
    %2 = vector.extract_strided_slice %0 {offsets = [1, 0], sizes = [1, 128], strides = [1, 1]} : vector<4x128xf32> to vector<1x128xf32>
    %3 = vector.extract_strided_slice %0 {offsets = [2, 0], sizes = [1, 128], strides = [1, 1]} : vector<4x128xf32> to vector<1x128xf32>
    %4 = vector.extract_strided_slice %0 {offsets = [3, 0], sizes = [1, 128], strides = [1, 1]} : vector<4x128xf32> to vector<1x128xf32>
    %cst = arith.constant 5.000000e-01 : f32
    %5 = vector.broadcast %cst : f32 to vector<1x128xf32>
    %6 = arith.mulf %5, %3 : vector<1x128xf32>
    %7 = arith.subf %1, %6 : vector<1x128xf32>
    %cst_1 = arith.constant 5.000000e-01 : f32
    %8 = vector.broadcast %cst_1 : f32 to vector<1x128xf32>
    %9 = arith.mulf %8, %4 : vector<1x128xf32>
    %10 = arith.subf %2, %9 : vector<1x128xf32>
    %cst_2 = arith.constant 5.000000e-01 : f32
    %11 = vector.broadcast %cst_2 : f32 to vector<1x128xf32>
    %12 = arith.mulf %11, %3 : vector<1x128xf32>
    %13 = arith.addf %1, %12 : vector<1x128xf32>
    %cst_3 = arith.constant 5.000000e-01 : f32
    %14 = vector.broadcast %cst_3 : f32 to vector<1x128xf32>
    %15 = arith.mulf %14, %4 : vector<1x128xf32>
    %16 = arith.addf %2, %15 : vector<1x128xf32>
    %17 = tpu.concatenate %7, %10, %13, %16 in 0 : vector<1x128xf32>, vector<1x128xf32>, vector<1x128xf32>, vector<1x128xf32> -> vector<4x128xf32>
    %c0_4 = arith.constant 0 : index
    %c0_5 = arith.constant 0 : index
    %18 = vector.load %arg2[%c0_4, %c0_5] : memref<2x128xf32, #tpu.memory_space<vmem>>, vector<1x128xf32>
    %c1 = arith.constant 1 : index
    %c0_6 = arith.constant 0 : index
    %19 = vector.load %arg2[%c1, %c0_6] : memref<2x128xf32, #tpu.memory_space<vmem>>, vector<1x128xf32>
    %20 = tpu.concatenate %19, %18, %19, %18 in 0 : vector<1x128xf32>, vector<1x128xf32>, vector<1x128xf32>, vector<1x128xf32> -> vector<4x128xf32>
    %21 = arith.mulf %17, %20 : vector<4x128xf32>
    %c0_7 = arith.constant 0 : index
    %c0_8 = arith.constant 0 : index
    %22 = vector.load %arg4[%c0_7, %c0_8] : memref<2x128xf32, #tpu.memory_space<vmem>>, vector<1x128xf32>
    %c1_9 = arith.constant 1 : index
    %c0_10 = arith.constant 0 : index
    %23 = vector.load %arg4[%c1_9, %c0_10] : memref<2x128xf32, #tpu.memory_space<vmem>>, vector<1x128xf32>
    %24 = tpu.concatenate %22, %23, %22, %23 in 0 : vector<1x128xf32>, vector<1x128xf32>, vector<1x128xf32>, vector<1x128xf32> -> vector<4x128xf32>
    %25 = arith.subf %21, %24 : vector<4x128xf32>
    %cst_11 = arith.constant 0.000000e+00 : f32
    %26 = vector.broadcast %cst_11 : f32 to vector<4x128xf32>
    %27 = arith.maximumf %25, %26 : vector<4x128xf32>
    %c0_12 = arith.constant 0 : index
    %c0_13 = arith.constant 0 : index
    %28 = vector.load %arg3[%c0_12, %c0_13] : memref<2x128xf32, #tpu.memory_space<vmem>>, vector<1x128xf32>
    %c1_14 = arith.constant 1 : index
    %c0_15 = arith.constant 0 : index
    %29 = vector.load %arg3[%c1_14, %c0_15] : memref<2x128xf32, #tpu.memory_space<vmem>>, vector<1x128xf32>
    %30 = tpu.concatenate %29, %28, %29, %28 in 0 : vector<1x128xf32>, vector<1x128xf32>, vector<1x128xf32>, vector<1x128xf32> -> vector<4x128xf32>
    %31 = arith.divf %27, %30 : vector<4x128xf32>
    %c0_16 = arith.constant 0 : index
    %c0_17 = arith.constant 0 : index
    %32 = vector.load %arg5[%c0_16, %c0_17] : memref<2x128xf32, #tpu.memory_space<vmem>>, vector<1x128xf32>
    %c1_18 = arith.constant 1 : index
    %c0_19 = arith.constant 0 : index
    %33 = vector.load %arg5[%c1_18, %c0_19] : memref<2x128xf32, #tpu.memory_space<vmem>>, vector<1x128xf32>
    %34 = tpu.concatenate %33, %32, %33, %32 in 0 : vector<1x128xf32>, vector<1x128xf32>, vector<1x128xf32>, vector<1x128xf32> -> vector<4x128xf32>
    %35 = arith.minimumf %31, %34 : vector<4x128xf32>
    %c0_20 = arith.constant 0 : index
    %c0_21 = arith.constant 0 : index
    %36 = vector.load %arg6[%c0_20, %c0_21] : memref<4x128xf32, #tpu.memory_space<vmem>>, vector<4x128xf32>
    tpu.vector_store %arg6[%c0_20, %c0_21], %35 {strides = array<i32>} : memref<4x128xf32, #tpu.memory_space<vmem>>, vector<4x128xf32>,
    return
  }
  func.func @transform_0(%arg0: i32) -> (i32, i32) {
    %c0_i32 = arith.constant 0 : i32
    %c0_i32_0 = arith.constant 0 : i32
    return %c0_i32, %arg0 : i32, i32
  }
  func.func @transform_1(%arg0: i32) -> (i32, i32) {
    %c0_i32 = arith.constant 0 : i32
    %c0_i32_0 = arith.constant 0 : i32
    return %c0_i32, %arg0 : i32, i32
  }
  func.func @transform_2(%arg0: i32) -> (i32, i32) {
    %c0_i32 = arith.constant 0 : i32
    %c0_i32_0 = arith.constant 0 : i32
    return %c0_i32, %arg0 : i32, i32
  }
  func.func @transform_3(%arg0: i32) -> (i32, i32) {
    %c0_i32 = arith.constant 0 : i32
    %c0_i32_0 = arith.constant 0 : i32
    return %c0_i32, %arg0 : i32, i32
  }
  func.func @transform_4(%arg0: i32) -> (i32, i32) {
    %c0_i32 = arith.constant 0 : i32
    %c0_i32_0 = arith.constant 0 : i32
    return %c0_i32, %arg0 : i32, i32
  }
  func.func @transform_5(%arg0: i32) -> (i32, i32) {
    %c0_i32 = arith.constant 0 : i32
    %c0_i32_0 = arith.constant 0 : i32
    return %c0_i32, %arg0 : i32, i32
  }
}

</mosaic_0001>

<bundles_post_ra>
// kernel: tpu_custom_call.1
= control target key start
LH: loop header
LB: loop body
LE: loop exit
PB: predicated region body
PF: predicated region fallthrough
CT: control target
= control target key end

     0   :  { %10 = vsyncpa [#allocation3], 0  ;;  %s268_s0 = inlined_call_operand.hbm [shape: f32[4,128], index: 0, kind: input, shape index: {}]   ;;  %s269_s1 = inlined_call_operand.vmem [shape: f32[2,128], index: 1, kind: input, shape index: {}]   ;;  %s270_s2 = inlined_call_operand.vmem [shape: f32[2,128], index: 2, kind: input, shape index: {}]   ;;  %s271_s3 = inlined_call_operand.vmem [shape: f32[2,128], index: 3, kind: input, shape index: {}]   ;;  %s272_s4 = inlined_call_operand.vmem [shape: f32[2,128], index: 4, kind: input, shape index: {}]   ;;  %s273_s5 = inlined_call_operand.hbm [shape: f32[4,128], index: 5, kind: output, shape index: {}]  }
   0x1   :  { %11 = vsyncpa [#allocation4], 0  ;;  %s174_s18 = smov [#allocation2]   ;;  %s126_s22 = scalar_lea.hbm %s268_s0, 64 }
   0x2   :  { %s18_s19 = sshll.u32 %s174_s18, 4  ;;  %p127_p0 = scmp.ne.s32.totalorder %s268_s0, %s126_s22  ;;  %s19_s19 = int_to_ptr.vmem [resolvable:$true] %s18_s19 }
   0x3   :  { %p130_p1 = scmp.lt.u32.totalorder %s126_s22, %s268_s0 }
   0x5   :  { %p132_p2 = pnand %p130_p1, %p127_p0 }
   0x7   :  { %135 = shalt.err (!%p132_p2)
}
   0x8   :  { %s136_s27 = scalar_lea.vmem %s19_s19, 64  ;;  %p141_p4 = scmp.lt.s32.totalorder %s19_s19, %s19_s19 }
   0x9   :  { %p137_p3 = scmp.ne.s32.totalorder %s19_s19, %s136_s27  ;;  %p142_p5 = scmp.lt.s32.totalorder %s136_s27, %s136_s27 }
   0xb   :  { %p143_p6 = por %p142_p5, %p141_p4 }
   0xd   :  { %p144_p7 = pnand %p143_p6, %p137_p3 }
   0xf   :  { %147 = shalt.err (!%p144_p7)
}
  0x10   :  { %21 = dma.hbm_to_vmem [thread:$0]  %s268_s0, 64, %s19_s19, [#allocation3]  }
  0x11   :  { %170 = dma.done.wait [#allocation3], 64  }
  0x12   :  { %171 = vsyncadd [#allocation3], 4294967232  ;;  %v33_v0 = vld [vmem:[#allocation2] sm:$0xf]  ;;  %vm43_vm0 = vcmask 1040384   ;;  %vm44_vm1 = vcmask 1041408  }
  0x13   :  { %v48_v1 = vld [vmem:[%s269_s1] sm:$0x1]  ;;  %v49_v2 = vld [vmem:[%s269_s1 + $0x1] sm:$0x1]  ;;  %v34_v3 = vmul.f32 0.5, %v33_v0  ;;  %vm46_vm2 = vcmask 1042432  }
  0x14   :  { %v51_v4 = vrot.slane %v48_v1, 7  ;;  %v54_v5 = vrot.slane %v49_v2, 6  ;;  %v62_v6 = vld [vmem:[%s271_s3] sm:$0x1]  ;;  %v63_v7 = vld [vmem:[%s271_s3 + $0x1] sm:$0x1] }
  0x15   :  { %v77_v8 = vld [vmem:[%s270_s2] sm:$0x1]  ;;  %v36_v9 = vrot.slane %v34_v3, 2  ;;  %v65_v11 = vrot.slane %v63_v7, 7  ;;  %v68_v12 = vrot.slane %v62_v6, 6  ;;  %v56_v14 = vrot.slane %v48_v1, 5 }
  0x16   :  { %v58_v10 = vsel %vm43_vm0, %v49_v2, %v51_v4  ;;  %v78_v13 = vld [vmem:[%s270_s2 + $0x1] sm:$0x1]  ;;  %v80_v15 = vrot.slane %v77_v8, 7  ;;  %v85_v17 = vrot.slane %v77_v8, 5  ;;  %v70_v22 = vrot.slane %v63_v7, 5  ;;  %s175_s17 = smov [#allocation5]  }
  0x17   :  { %v83_v16 = vrot.slane %v78_v13, 6  ;;  %v38_v18 = vsub.f32 %v33_v0, %v36_v9  ;;  %v39_v19 = vadd.f32 %v36_v9, %v33_v0  ;;  %v59_v20 = vsel %vm44_vm1, %v58_v10, %v54_v5  ;;  %v92_v24 = vld [vmem:[%s272_s4] sm:$0x1]  ;;  %v93_v31 = vld [vmem:[%s272_s4 + $0x1] sm:$0x1]  ;;  %s113_s18 = sshll.u32 %s175_s17, 4  ;;  %s114_s18 = int_to_ptr.vmem [resolvable:$true] %s113_s18 }
  0x18   :  { %v72_v21 = vsel %vm43_vm0, %v62_v6, %v65_v11  ;;  %v87_v23 = vsel %vm43_vm0, %v78_v13, %v80_v15  ;;  %v60_v28 = vsel %vm46_vm2, %v59_v20, %v56_v14  ;;  %v95_v32 = vrot.slane %v92_v24, 7  ;;  %s148_s4 = scalar_lea.vmem %s114_s18, 64  ;;  %p153_p9 = scmp.lt.s32.totalorder %s114_s18, %s114_s18 }
  0x19   :  { %v41_v25 = vrot.slane %v39_v19, 6  ;;  %v73_v26 = vsel %vm44_vm1, %v72_v21, %v68_v12  ;;  %v88_v27 = vsel %vm44_vm1, %v87_v23, %v83_v16  ;;  %v98_v36 = vrot.slane %v93_v31, 6  ;;  %p149_p8 = scmp.ne.s32.totalorder %s114_s18, %s148_s4  ;;  %p154_p10 = scmp.lt.s32.totalorder %s148_s4, %s148_s4 }
  0x1a   :  { %v89_v29 = vsel %vm46_vm2, %v88_v27, %v85_v17  ;;  %v74_v34 = vsel %vm46_vm2, %v73_v26, %v70_v22  ;;  %v102_v38 = vsel %vm43_vm0, %v93_v31, %v95_v32  ;;  %v100_v39 = vrot.slane %v92_v24, 5 }
  0x1b   :  { %v45_v30 = vsel %vm44_vm1, %v38_v18, %v41_v25  ;;  %124 = vrcp.f32 %v89_v29  ;;  %v103_v41 = vsel %vm44_vm1, %v102_v38, %v98_v36  ;;  %p155_p11 = por %p154_p10, %p153_p9 }
  0x1c   :  { %v47_v33 = vsel %vm46_vm2, %v45_v30, %v41_v25  ;;  %v104_v43 = vsel %vm46_vm2, %v103_v41, %v100_v39 }
  0x1d   :  { %v61_v35 = vmul.f32 %v60_v28, %v47_v33  ;;  %p156_p12 = pnand %p155_p11, %p149_p8 }
  0x1f   :  { %v75_v37 = vsub.f32 %v61_v35, %v74_v34 }
  0x21   :  { %v76_v40 = vmax.f32 %v75_v37, 0.0 }
  0x25   :  { %v125_v42 = vpop.eup %124 }
  0x26   :  { %v91_v44 = vmul.f32 %v125_v42, %v76_v40 }
  0x28   :  { %v105_v45 = vmin.f32 %v91_v44, %v104_v43 }
  0x2a   :  { %106 = vst [vmem:[#allocation5] sm:$0xf] %v105_v45 }
  0x2b   :  { %159 = shalt.err (!%p156_p12)
}
  0x2c   :  { %s160_s21 = scalar_lea.hbm %s273_s5, 64 }
  0x2d   :  { %p161_p13 = scmp.ne.s32.totalorder %s273_s5, %s160_s21  ;;  %p164_p0 = scmp.lt.u32.totalorder %s160_s21, %s273_s5 }
  0x2f   :  { %p166_p1 = pnand %p164_p0, %p161_p13 }
  0x31   :  { %169 = shalt.err (!%p166_p1)
}
  0x32   :  { %116 = dma.vmem_to_hbm [thread:$0]  %s114_s18, 64, %s273_s5, [#allocation4]  }
  0x33   :  { %172 = dma.done.wait [#allocation4], 64  }
  0x34   :  { %173 = vsyncadd [#allocation4], 4294967232 }
  0x35   :  { %120 = vsyncpa [#allocation3], 1 }
  0x36   :  { %121 = vsyncpa [#allocation4], 1 }

</bundles_post_ra>
